<compile_context>
chip_gen: v7x
topology: tpu7x:2x2x1
jax: 0.10.0
libtpu: 0.0.40
codegen_flags: <defaults>
</compile_context>

<pallas_src>
import functools

import jax
import jax.numpy as jnp
import numpy as np
from jax.experimental import pallas as pl
from jax.experimental.pallas import tpu as pltpu

HIDDEN = 64          # hp.hidden
LANE = 128           # TPU lane width
SUBLANE = 8          # f32 sublane width
MAX_TILE_B = 1024    # batch rows per grid step (multiple of 8)


def _round_up(x, m):
    return ((x + m - 1) // m) * m


def _cdiv(a, b):
    return (a + b - 1) // b


def _pad2(a, rows, cols):
    return jnp.pad(a, ((0, rows - a.shape[0]), (0, cols - a.shape[1])))


# --------------------------------------------------------------------------
# Kernel
# --------------------------------------------------------------------------
def actor_kernel(x_ref, w1_ref, w2_ref, w3_ref, b_ref, mu_ref):
    """Fused 3-layer MLP tile: mu = tanh(tanh(x@w1+b1)@w2+b2)@w3 + b3.

    Weights may be bf16 (MXU-native); accumulation (preferred_element_type),
    bias-add and tanh stay f32 (no bf16 VPU/EUP path on v5e).
    """
    w1 = w1_ref[...]
    w2 = w2_ref[...]
    w3 = w3_ref[...]
    wd = w1.dtype
    cast = lambda a: a.astype(wd) if a.dtype != wd else a

    x = x_ref[...]
    # fc1 + tanh   (TILE_B, in) @ (in, 128)
    h1 = jnp.tanh(
        jnp.dot(cast(x), w1, preferred_element_type=jnp.float32) + b_ref[0:1, :])
    # fc2 + tanh   (TILE_B, 128) @ (128, 128)
    h2 = jnp.tanh(
        jnp.dot(cast(h1), w2, preferred_element_type=jnp.float32) + b_ref[1:2, :])
    # fc3 -> mu    (TILE_B, 128) @ (128, num_outputs)   (native-width store)
    mu = (jnp.dot(cast(h2), w3, preferred_element_type=jnp.float32)
          + b_ref[2:3, :w3.shape[1]])
    mu_ref[...] = mu.astype(mu_ref.dtype)


# --------------------------------------------------------------------------
# One-time parameter preparation (hoisted out of the per-call path)
# --------------------------------------------------------------------------
def prepare_params(params, *, weight_dtype=jnp.float32):
    """Pad hidden dim to 128 lanes, pack the 3 biases into one (3,128) f32 array,
    and (optionally) cast weights to bf16.  Call once per policy update; reuse
    the result for every actor_forward call.  Zero-padding is numerically exact
    (tanh(0+0)=0 propagates through the padded hidden columns)."""
    num_inputs, hidden = params["w1"].shape
    num_outputs = params["w3"].shape[1]
    h_pad = _round_up(hidden, LANE)        # 64 -> 128

    w1 = _pad2(params["w1"], num_inputs, h_pad).astype(weight_dtype)
    w2 = _pad2(params["w2"], h_pad, h_pad).astype(weight_dtype)
    w3 = _pad2(params["w3"], h_pad, num_outputs).astype(weight_dtype)  # native out width
    b = jnp.concatenate(
        [_pad2(params["b1"], 1, h_pad),
         _pad2(params["b2"], 1, h_pad),
         _pad2(params["b3"], 1, h_pad)], axis=0).astype(jnp.float32)   # (3, 128)
    return dict(w1=w1, w2=w2, w3=w3, b=b)


# --------------------------------------------------------------------------
# Forward wrapper
# --------------------------------------------------------------------------
def actor_forward(x, prep):
    """x: (B, num_inputs) float32.  prep: output of prepare_params()."""
    B = x.shape[0]
    w1, w2, w3, b = prep["w1"], prep["w2"], prep["w3"], prep["b"]
    num_inputs, h_pad = w1.shape
    num_outputs = w3.shape[1]
    assert x.shape[1] == num_inputs

    # Batch tiling: last tile nearly full, >=2 steps (when enough rows) so the
    # "parallel" batch axis can occupy both v7x TensorCores.
    b8 = _round_up(B, SUBLANE)
    steps = max(1, _cdiv(b8, MAX_TILE_B))
    if b8 >= 2 * SUBLANE:
        steps = max(steps, 2)
    tile_b = _round_up(_cdiv(b8, steps), SUBLANE)
    grid_steps = _cdiv(b8, tile_b)
    b_pad = grid_steps * tile_b
    if b_pad != B:
        x = jnp.pad(x, ((0, b_pad - B), (0, 0)))

    const2 = lambda i: (0, 0)   # weights/biases stay VMEM-resident across steps

    itemsize = lambda a: a.size * a.dtype.itemsize
    flops = 2 * b_pad * (num_inputs * h_pad + h_pad * h_pad + h_pad * num_outputs)
    bytes_accessed = (itemsize(x)
                      + itemsize(w1) + itemsize(w2) + itemsize(w3) + itemsize(b)
                      + b_pad * num_outputs * 4)

    mu_full = pl.pallas_call(
        actor_kernel,
        out_shape=jax.ShapeDtypeStruct((b_pad, num_outputs), jnp.float32),
        grid=(grid_steps,),
        in_specs=[
            pl.BlockSpec((tile_b, num_inputs), lambda i: (i, 0)),   # x tile
            pl.BlockSpec((num_inputs, h_pad), const2),              # w1
            pl.BlockSpec((h_pad, h_pad), const2),                   # w2
            pl.BlockSpec((h_pad, num_outputs), const2),             # w3 (native width)
            pl.BlockSpec((3, h_pad), const2),                       # packed biases
        ],
        out_specs=pl.BlockSpec((tile_b, num_outputs), lambda i: (i, 0)),
        compiler_params=pltpu.CompilerParams(
            dimension_semantics=("parallel",),      # shard batch across TCs (v7x)
        ),
        cost_estimate=pl.CostEstimate(
            flops=flops,
            transcendentals=2 * b_pad * h_pad,      # two tanh layers
            bytes_accessed=bytes_accessed,
        ),
    )(x, w1, w2, w3, b)

    mu = mu_full[:B] if b_pad != B else mu_full
    # Spec's forward: logstd = zeros_like(mu); std = exp(logstd) == ones.
    # Input-independent constants -> produced in the wrapper, not the kernel.
    logstd = jnp.zeros_like(mu)
    std = jnp.ones_like(mu)
    return mu, std, logstd


# --------------------------------------------------------------------------
# Init + pure-JAX reference
# --------------------------------------------------------------------------
def init_actor_params(key, num_inputs, num_outputs, hidden=HIDDEN):
    """PyTorch nn.Linear default init (U[-1/sqrt(fan_in), 1/sqrt(fan_in)]),
    then fc3.weight *= 0.1, fc3.bias *= 0.0 (as in Actor.__init__)."""
    ks = jax.random.split(key, 6)

    def lin(kw, kb, fan_in, fan_out):
        bound = 1.0 / np.sqrt(fan_in)
        w = jax.random.uniform(kw, (fan_in, fan_out), jnp.float32, -bound, bound)
        b = jax.random.uniform(kb, (1, fan_out), jnp.float32, -bound, bound)
        return w, b

    w1, b1 = lin(ks[0], ks[1], num_inputs, hidden)
    w2, b2 = lin(ks[2], ks[3], hidden, hidden)
    w3, b3 = lin(ks[4], ks[5], hidden, num_outputs)
    return dict(w1=w1, b1=b1, w2=w2, b2=b2, w3=w3 * 0.1, b3=b3 * 0.0)


def actor_reference(x, p):
    h1 = jnp.tanh(x @ p["w1"] + p["b1"])
    h2 = jnp.tanh(h1 @ p["w2"] + p["b2"])
    mu = h2 @ p["w3"] + p["b3"]
    logstd = jnp.zeros_like(mu)
    std = jnp.exp(logstd)
    return mu, std, logstd


if __name__ == "__main__":
    key = jax.random.PRNGKey(0)
    k_param, k_x = jax.random.split(key)

    batch = 8          # small batch (MuJoCo rollout step)
    num_inputs = 16    # observation dim
    num_outputs = 8    # action dim

    params = init_actor_params(k_param, num_inputs, num_outputs)
    x = jax.random.normal(k_x, (batch, num_inputs), jnp.float32)

    fwd = jax.jit(actor_forward)

    # --- f32 weights: bit-tight check against the pure-JAX reference ---------
    prep_f32 = jax.tree_util.tree_map(jax.block_until_ready,
                                      prepare_params(params, weight_dtype=jnp.float32))
    mu, std, logstd = fwd(x, prep_f32)
    jax.block_until_ready((mu, std, logstd))

    mu_r, std_r, logstd_r = actor_reference(x, params)
    np.testing.assert_allclose(np.asarray(mu), np.asarray(mu_r), rtol=1e-5, atol=1e-5)
    np.testing.assert_allclose(np.asarray(std), np.asarray(std_r), rtol=1e-6, atol=1e-6)
    np.testing.assert_allclose(np.asarray(logstd), np.asarray(logstd_r), rtol=1e-6, atol=1e-6)

    # --- bf16 weights (production path): loose tolerance ---------------------
    prep_bf16 = jax.tree_util.tree_map(jax.block_until_ready,
                                       prepare_params(params, weight_dtype=jnp.bfloat16))
    mu_b, _, _ = fwd(x, prep_bf16)
    jax.block_until_ready(mu_b)
    np.testing.assert_allclose(np.asarray(mu_b), np.asarray(mu_r), rtol=2e-2, atol=2e-2)

    print("KERNEL_OK")
</pallas_src>

<mosaic_0001>
module attributes {stable_mosaic.version = 11 : i64} {
  func.func @actor_kernel(%arg0: i32, %arg1: memref<8x16xf32, #tpu.memory_space<vmem>>, %arg2: memref<16x128xf32, #tpu.memory_space<vmem>>, %arg3: memref<128x128xf32, #tpu.memory_space<vmem>>, %arg4: memref<128x8xf32, #tpu.memory_space<vmem>>, %arg5: memref<3x128xf32, #tpu.memory_space<vmem>>, %arg6: memref<8x8xf32, #tpu.memory_space<vmem>>) attributes {dimension_semantics = [#tpu.dimension_semantics<parallel>], iteration_bounds = array<i64: 1>, scalar_prefetch = 0 : i64, scratch_operands = 0 : i64, tpu.core_type = #tpu.core_type<tc>, window_params = [{transform_indices = @transform_0, window_bounds = array<i64: 8, 16>}, {pipeline_mode = #tpu.pipeline_mode<synchronous>, transform_indices = @transform_1, window_bounds = array<i64: 16, 128>}, {pipeline_mode = #tpu.pipeline_mode<synchronous>, transform_indices = @transform_2, window_bounds = array<i64: 128, 128>}, {pipeline_mode = #tpu.pipeline_mode<synchronous>, transform_indices = @transform_3, window_bounds = array<i64: 128, 8>}, {pipeline_mode = #tpu.pipeline_mode<synchronous>, transform_indices = @transform_4, window_bounds = array<i64: 3, 128>}, {transform_indices = @transform_5, window_bounds = array<i64: 8, 8>}]} {
    %c0 = arith.constant 0 : index
    %c0_0 = arith.constant 0 : index
    %0 = vector.load %arg2[%c0, %c0_0] : memref<16x128xf32, #tpu.memory_space<vmem>>, vector<16x128xf32>
    %c0_1 = arith.constant 0 : index
    %c0_2 = arith.constant 0 : index
    %1 = vector.load %arg3[%c0_1, %c0_2] : memref<128x128xf32, #tpu.memory_space<vmem>>, vector<128x128xf32>
    %c0_3 = arith.constant 0 : index
    %c0_4 = arith.constant 0 : index
    %2 = vector.load %arg4[%c0_3, %c0_4] : memref<128x8xf32, #tpu.memory_space<vmem>>, vector<128x8xf32>
    %c0_5 = arith.constant 0 : index
    %c0_6 = arith.constant 0 : index
    %3 = vector.load %arg1[%c0_5, %c0_6] : memref<8x16xf32, #tpu.memory_space<vmem>>, vector<8x16xf32>
    %cst = arith.constant dense<0.000000e+00> : vector<8x128xf32>
    %4 = tpu.matmul %3, %0, %cst {dimension_numbers = #tpu.dot_dimension_numbers<[1], [0], [0], [1], [0, 0, 1, 1], [], []>} : vector<8x16xf32>, vector<16x128xf32>, vector<8x128xf32> -> vector<8x128xf32>
    %c0_7 = arith.constant 0 : index
    %c0_8 = arith.constant 0 : index
    %5 = vector.load %arg5[%c0_7, %c0_8] : memref<3x128xf32, #tpu.memory_space<vmem>>, vector<1x128xf32>
    %6 = vector.broadcast %5 : vector<1x128xf32> to vector<8x128xf32>
    %7 = arith.addf %4, %6 : vector<8x128xf32>
    %8 = math.tanh %7 : vector<8x128xf32>
    %cst_9 = arith.constant dense<0.000000e+00> : vector<8x128xf32>
    %9 = tpu.matmul %8, %1, %cst_9 {dimension_numbers = #tpu.dot_dimension_numbers<[1], [0], [0], [1], [0, 0, 1, 1], [], []>} : vector<8x128xf32>, vector<128x128xf32>, vector<8x128xf32> -> vector<8x128xf32>
    %c1 = arith.constant 1 : index
    %c0_10 = arith.constant 0 : index
    %10 = vector.load %arg5[%c1, %c0_10] : memref<3x128xf32, #tpu.memory_space<vmem>>, vector<1x128xf32>
    %11 = vector.broadcast %10 : vector<1x128xf32> to vector<8x128xf32>
    %12 = arith.addf %9, %11 : vector<8x128xf32>
    %13 = math.tanh %12 : vector<8x128xf32>
    %cst_11 = arith.constant dense<0.000000e+00> : vector<8x8xf32>
    %14 = tpu.matmul %13, %2, %cst_11 {dimension_numbers = #tpu.dot_dimension_numbers<[1], [0], [0], [1], [0, 0, 1, 1], [], []>} : vector<8x128xf32>, vector<128x8xf32>, vector<8x8xf32> -> vector<8x8xf32>
    %c2 = arith.constant 2 : index
    %c0_12 = arith.constant 0 : index
    %15 = vector.load %arg5[%c2, %c0_12] : memref<3x128xf32, #tpu.memory_space<vmem>>, vector<1x8xf32>
    %16 = vector.broadcast %15 : vector<1x8xf32> to vector<8x8xf32>
    %17 = arith.addf %14, %16 : vector<8x8xf32>
    %c0_13 = arith.constant 0 : index
    %c0_14 = arith.constant 0 : index
    %18 = vector.load %arg6[%c0_13, %c0_14] : memref<8x8xf32, #tpu.memory_space<vmem>>, vector<8x8xf32>
    tpu.vector_store %arg6[%c0_13, %c0_14], %17 {strides = array<i32>} : memref<8x8xf32, #tpu.memory_space<vmem>>, vector<8x8xf32>,
    return
  }
  func.func @transform_0(%arg0: i32) -> (i32, i32) {
    %c0_i32 = arith.constant 0 : i32
    %c0_i32_0 = arith.constant 0 : i32
    return %arg0, %c0_i32 : i32, i32
  }
  func.func @transform_1(%arg0: i32) -> (i32, i32) {
    %c0_i32 = arith.constant 0 : i32
    %c0_i32_0 = arith.constant 0 : i32
    %c0_i32_1 = arith.constant 0 : i32
    return %c0_i32, %c0_i32_0 : i32, i32
  }
  func.func @transform_2(%arg0: i32) -> (i32, i32) {
    %c0_i32 = arith.constant 0 : i32
    %c0_i32_0 = arith.constant 0 : i32
    %c0_i32_1 = arith.constant 0 : i32
    return %c0_i32, %c0_i32_0 : i32, i32
  }
  func.func @transform_3(%arg0: i32) -> (i32, i32) {
    %c0_i32 = arith.constant 0 : i32
    %c0_i32_0 = arith.constant 0 : i32
    %c0_i32_1 = arith.constant 0 : i32
    return %c0_i32, %c0_i32_0 : i32, i32
  }
  func.func @transform_4(%arg0: i32) -> (i32, i32) {
    %c0_i32 = arith.constant 0 : i32
    %c0_i32_0 = arith.constant 0 : i32
    %c0_i32_1 = arith.constant 0 : i32
    return %c0_i32, %c0_i32_0 : i32, i32
  }
  func.func @transform_5(%arg0: i32) -> (i32, i32) {
    %c0_i32 = arith.constant 0 : i32
    %c0_i32_0 = arith.constant 0 : i32
    return %arg0, %c0_i32 : i32, i32
  }
}

</mosaic_0001>

<bundles_post_ra>
// kernel: actor_forward.1
= control target key start
LH: loop header
LB: loop body
LE: loop exit
PB: predicated region body
PF: predicated region fallthrough
CT: control target
= control target key end

     0   :  { %10 = vsyncpa [#allocation3], 0  ;;  %s735_s0 = inlined_call_operand.vmem [shape: f32[8,16], index: 0, kind: input, shape index: {}]   ;;  %s736_s1 = inlined_call_operand.hbm [shape: f32[16,128], index: 1, kind: input, shape index: {}]   ;;  %s737_s2 = inlined_call_operand.vmem [shape: f32[128,128], index: 2, kind: input, shape index: {}]   ;;  %s738_s3 = inlined_call_operand.vmem [shape: f32[128,8], index: 3, kind: input, shape index: {}]   ;;  %s739_s4 = inlined_call_operand.vmem [shape: f32[3,128], index: 4, kind: input, shape index: {}]   ;;  %s740_s5 = inlined_call_operand.hbm [shape: f32[8,8], index: 5, kind: output, shape index: {}]  }
   0x1   :  { %11 = vsyncpa [#allocation4], 0  ;;  %s546_s18 = smov [#allocation2]   ;;  %s498_s22 = scalar_lea.hbm %s736_s1, 256 }
   0x2   :  { %s19_s19 = sshll.u32 %s546_s18, 4  ;;  %p499_p0 = scmp.ne.s32.totalorder %s736_s1, %s498_s22  ;;  %s20_s19 = int_to_ptr.vmem [resolvable:$true] %s19_s19 }
   0x3   :  { %p502_p1 = scmp.lt.u32.totalorder %s498_s22, %s736_s1 }
   0x5   :  { %p504_p2 = pnand %p502_p1, %p499_p0 }
   0x7   :  { %507 = shalt.err (!%p504_p2)
}
   0x8   :  { %s508_s27 = scalar_lea.vmem %s20_s19, 256  ;;  %p513_p4 = scmp.lt.s32.totalorder %s20_s19, %s20_s19 }
   0x9   :  { %p509_p3 = scmp.ne.s32.totalorder %s20_s19, %s508_s27  ;;  %p514_p5 = scmp.lt.s32.totalorder %s508_s27, %s508_s27 }
   0xb   :  { %p515_p6 = por %p514_p5, %p513_p4 }
   0xd   :  { %p516_p7 = pnand %p515_p6, %p509_p3 }
   0xf   :  { %519 = shalt.err (!%p516_p7)
}
  0x10   :  { %s547_s28 = smov 128   ;;  %s548_s29 = smov 8  }
  0x11   :  { %25 = dma.hbm_to_vmem [thread:$0]  %s736_s1, 256, %s20_s19, [#allocation3], %s547_s28, %s547_s28, %s548_s29  }
  0x12   :  { %542 = dma.done.wait [#allocation3], 256  }
  0x13   :  { %543 = vsyncadd [#allocation3], 4294967040  ;;  %v549_v0 = vmov 0.0|0.0   ;;  %vm550_vm0 = vmmov 0   ;;  %v551_v1 = vmov 0.0   ;;  %v35_v2 = vld [vmem:[#allocation2] sm:$0xff] }
  0x14   :  { %436 = vmatprep.subr.bf16.mxu0 %v549_v0  ;;  %363 = vmatprep.mubr.msk.f32.mxu0 %vm550_vm0, %v551_v1  ;;  %v36_v3 = vld [vmem:[#allocation2 + $0x8] sm:$0xff]  ;;  %v37_v5 = vld [vmem:[%s737_s2] sm:$0xff]  ;;  %v39_v7 = vld [vmem:[%s737_s2 + $0x10] sm:$0xff]  ;;  %vm75_vm1 = vcmask 130048   ;;  %vm301_vm2 = vcmask 64512  }
  0x15   :  { %439 = vmatprep.subr.bf16.mxu1 %v549_v0  ;;  %398 = vmatprep.mubr.msk.f32.mxu1 %vm550_vm0, %v551_v1  ;;  %v437_v4 = vpack.c.bf16 %v36_v3, %v35_v2  ;;  %v38_v6 = vld [vmem:[%s737_s2 + $0x8] sm:$0xff]  ;;  %v40_v9 = vld [vmem:[%s737_s2 + $0x18] sm:$0xff]  ;;  %v69_v10 = vld [vmem:[%s735_s0] sm:$0xff] }
  0x16   :  { %v440_v8 = vpack.c.bf16 %v38_v6, %v37_v5  ;;  %v443_v11 = vpack.c.bf16 %v40_v9, %v39_v7  ;;  %v41_v12 = vld [vmem:[%s737_s2 + $0x20] sm:$0xff]  ;;  %v42_v13 = vld [vmem:[%s737_s2 + $0x28] sm:$0xff]  ;;  %v43_v15 = vld [vmem:[%s737_s2 + $0x30] sm:$0xff] }
  0x17   :  { %438 = vmatpush3.bf16.msra.mxu0 %v437_v4  ;;  %v446_v14 = vpack.c.bf16 %v42_v13, %v41_v12  ;;  %v44_v16 = vld [vmem:[%s737_s2 + $0x38] sm:$0xff]  ;;  %v45_v18 = vld [vmem:[%s737_s2 + $0x40] sm:$0xff]  ;;  %v46_v19 = vld [vmem:[%s737_s2 + $0x48] sm:$0xff] }
  0x18   :  { %441 = vmatpush3.bf16.msra.mxu1 %v440_v8  ;;  %463 = vmatprep.subr.bf16.mxu0 %v549_v0  ;;  %v449_v17 = vpack.c.bf16 %v44_v16, %v43_v15  ;;  %v452_v20 = vpack.c.bf16 %v46_v19, %v45_v18  ;;  %v47_v21 = vld [vmem:[%s737_s2 + $0x50] sm:$0xff]  ;;  %v48_v22 = vld [vmem:[%s737_s2 + $0x58] sm:$0xff]  ;;  %v49_v24 = vld [vmem:[%s737_s2 + $0x60] sm:$0xff] }
  0x19   :  { %442 = vmatprep.subr.bf16.mxu1 %v549_v0  ;;  %v455_v23 = vpack.c.bf16 %v48_v22, %v47_v21  ;;  %v50_v25 = vld [vmem:[%s737_s2 + $0x68] sm:$0xff]  ;;  %v51_v27 = vld [vmem:[%s737_s2 + $0x70] sm:$0xff]  ;;  %v52_v28 = vld [vmem:[%s737_s2 + $0x78] sm:$0xff] }
  0x1a   :  { %364 = vmatmul.mubr.msk.f32.vlgmr.msra.gmra.mrb[0].mxu0 %vm75_vm1, %v69_v10  ;;  %v458_v26 = vpack.c.bf16 %v50_v25, %v49_v24  ;;  %v461_v29 = vpack.c.bf16 %v52_v28, %v51_v27  ;;  %v53_v30 = vld [vmem:[%s738_s3] sm:$0xff]  ;;  %v54_v31 = vld [vmem:[%s738_s3 + $0x8] sm:$0xff]  ;;  %v55_v32 = vld [vmem:[%s738_s3 + $0x10] sm:$0xff] }
  0x1b   :  { %433 = vmatprep.mubr.msk.f32.mxu0 %vm550_vm0, %v551_v1  ;;  %v464_v33 = vpack.c.bf16 %v54_v31, %v53_v30  ;;  %v56_v34 = vld [vmem:[%s738_s3 + $0x18] sm:$0xff]  ;;  %v57_v36 = vld [vmem:[%s738_s3 + $0x20] sm:$0xff]  ;;  %v58_v37 = vld [vmem:[%s738_s3 + $0x28] sm:$0xff] }
  0x1c   :  { %444 = vmatpush3.bf16.msra.mxu1 %v443_v11  ;;  %v467_v35 = vpack.c.bf16 %v56_v34, %v55_v32  ;;  %v470_v38 = vpack.c.bf16 %v58_v37, %v57_v36  ;;  %v59_v39 = vld [vmem:[%s738_s3 + $0x30] sm:$0xff]  ;;  %v60_v40 = vld [vmem:[%s738_s3 + $0x38] sm:$0xff]  ;;  %v61_v42 = vld [vmem:[%s738_s3 + $0x40] sm:$0xff] }
  0x1d   :  { %445 = vmatprep.subr.bf16.mxu1 %v549_v0  ;;  %465 = vmatpush3.bf16.msra.mxu0 %v464_v33  ;;  %v473_v41 = vpack.c.bf16 %v60_v40, %v59_v39  ;;  %v62_v43 = vld [vmem:[%s738_s3 + $0x48] sm:$0xff]  ;;  %v318_v45 = vld [vmem:[%s739_s4] ss:$0 sm:$0xff]  ;;  %v63_v50 = vld [vmem:[%s738_s3 + $0x50] sm:$0xff] }
  0x1e   :  { %466 = vmatprep.subr.bf16.mxu0 %v549_v0  ;;  %v476_v44 = vpack.c.bf16 %v62_v43, %v61_v42  ;;  %v64_v51 = vld [vmem:[%s738_s3 + $0x58] sm:$0xff]  ;;  %v65_v53 = vld [vmem:[%s738_s3 + $0x60] sm:$0xff]  ;;  %v66_v54 = vld [vmem:[%s738_s3 + $0x68] sm:$0xff] }
  0x1f   :  { %v479_v52 = vpack.c.bf16 %v64_v51, %v63_v50  ;;  %v482_v55 = vpack.c.bf16 %v66_v54, %v65_v53  ;;  %v67_v56 = vld [vmem:[%s738_s3 + $0x70] sm:$0xff]  ;;  %v68_v57 = vld [vmem:[%s738_s3 + $0x78] sm:$0xff]  ;;  %v320_v59 = vld [vmem:[%s739_s4 + $0x1] ss:$0 sm:$0xff]  ;;  %s552_s3 = smov [#allocation5]  }
  0x20   :  { %447 = vmatpush3.bf16.msra.mxu1 %v446_v14  ;;  %v485_v58 = vpack.c.bf16 %v68_v57, %v67_v56  ;;  %v321_v1 = vld [vmem:[%s739_s4 + $0x2] ss:$0 sm:$0xff]  ;;  %s309_s21 = sshll.u32 %s552_s3, 4  ;;  %s310_s21 = int_to_ptr.vmem [resolvable:$true] %s309_s21 }
  0x21   :  { %448 = vmatprep.subr.bf16.mxu1 %v549_v0  ;;  %468 = vmatpush3.bf16.msra.mxu0 %v467_v35  ;;  %s520_s22 = scalar_lea.vmem %s310_s21, 128  ;;  %p525_p9 = scmp.lt.s32.totalorder %s310_s21, %s310_s21 }
  0x22   :  { %469 = vmatprep.subr.bf16.mxu0 %v549_v0  ;;  %p521_p8 = scmp.ne.s32.totalorder %s310_s21, %s520_s22  ;;  %p526_p10 = scmp.lt.s32.totalorder %s520_s22, %s520_s22 }
  0x24   :  { %450 = vmatpush3.bf16.msra.mxu1 %v449_v17  ;;  %p527_p11 = por %p526_p10, %p525_p9 }
  0x25   :  { %451 = vmatprep.subr.bf16.mxu1 %v549_v0  ;;  %471 = vmatpush3.bf16.msra.mxu0 %v470_v38 }
  0x26   :  { %472 = vmatprep.subr.bf16.mxu0 %v549_v0  ;;  %p528_p12 = pnand %p527_p11, %p521_p8 }
  0x28   :  { %453 = vmatpush3.bf16.msra.mxu1 %v452_v20 }
  0x29   :  { %454 = vmatprep.subr.bf16.mxu1 %v549_v0  ;;  %474 = vmatpush3.bf16.msra.mxu0 %v473_v41 }
  0x2a   :  { %475 = vmatprep.subr.bf16.mxu0 %v549_v0 }
  0x2c   :  { %456 = vmatpush3.bf16.msra.mxu1 %v455_v23 }
  0x2d   :  { %457 = vmatprep.subr.bf16.mxu1 %v549_v0  ;;  %477 = vmatpush3.bf16.msra.mxu0 %v476_v44 }
  0x2e   :  { %478 = vmatprep.subr.bf16.mxu0 %v549_v0 }
  0x30   :  { %459 = vmatpush3.bf16.msra.mxu1 %v458_v26 }
  0x31   :  { %460 = vmatprep.subr.bf16.mxu1 %v549_v0  ;;  %480 = vmatpush3.bf16.msra.mxu0 %v479_v52 }
  0x32   :  { %481 = vmatprep.subr.bf16.mxu0 %v549_v0 }
  0x34   :  { %462 = vmatpush3.bf16.msra.mxu1 %v461_v29 }
  0x35   :  { %483 = vmatpush3.bf16.msra.mxu0 %v482_v55 }
  0x36   :  { %484 = vmatprep.subr.bf16.mxu0 %v549_v0 }
  0x39   :  { %486 = vmatpush3.bf16.msra.mxu0 %v485_v58 }
  0xed   :  { %v145_v46 = vpop.f32.mrb[0].mxu0 }
  0xee   :  { %v146_v47 = vadd.f32 %v318_v45, %v145_v46  ;;  %v365_v48 = vpop.f32.mrb[1].mxu0 }
  0xf0   :  { %494 = vtanh.f32 %v146_v47 }
  0xfa   :  { %v495_v49 = vpop.eup %494 }
  0xfb   :  { %399 = vmatmul.mubr.f32.vlgmr.msra.gmra.mrb[0].mxu1 %v495_v49 }
 0x1ce   :  { %v221_v60 = vpop.f32.mrb[0].mxu1 }
 0x1cf   :  { %v222_v61 = vadd.f32 %v320_v59, %v221_v60  ;;  %v400_v62 = vpop.f32.mrb[1].mxu1 }
 0x1d1   :  { %496 = vtanh.f32 %v222_v61 }
 0x1db   :  { %v497_v63 = vpop.eup %496 }
 0x1dc   :  { %434 = vmatmul.mubr.f32.vlgmr.msra.gmra.mrb[2].mxu0 %v497_v63 }
 0x2af   :  { %v297_v2 = vpop.f32.mrb[2].mxu0 }
 0x2b0   :  { %v298_v0 = vadd.f32 %v321_v1, %v297_v2  ;;  %v435_v3 = vpop.f32.mrb[3].mxu0 }
 0x2b2   :  { %302 = vst.msk [vmem:[#allocation5] sm:$0xff] %vm301_vm2, %v298_v0 }
 0x2b3   :  { %531 = shalt.err (!%p528_p12)
}
 0x2b4   :  { %s532_s25 = scalar_lea.hbm %s740_s5, 128 }
 0x2b5   :  { %p533_p13 = scmp.ne.s32.totalorder %s740_s5, %s532_s25  ;;  %p536_p0 = scmp.lt.u32.totalorder %s532_s25, %s740_s5 }
 0x2b7   :  { %p538_p1 = pnand %p536_p0, %p533_p13 }
 0x2b9   :  { %541 = shalt.err (!%p538_p1)
}
 0x2ba   :  { %312 = dma.vmem_to_hbm [thread:$0]  %s310_s21, 128, %s740_s5, [#allocation4]  }
 0x2bb   :  { %544 = dma.done.wait [#allocation4], 128  }
 0x2bc   :  { %545 = vsyncadd [#allocation4], 4294967168 }
 0x2bd   :  { %316 = vsyncpa [#allocation3], 1 }
 0x2be   :  { %317 = vsyncpa [#allocation4], 1 }

</bundles_post_ra>
